<compile_context>
chip_gen: v7x
topology: tpu7x:2x2x1
jax: 0.10.0
libtpu: 0.0.40
codegen_flags: <defaults>
</compile_context>

<pallas_src>
import functools

import jax
import jax.numpy as jnp
from jax.experimental import pallas as pl
from jax.experimental.pallas import tpu as pltpu


# ---------------------------------------------------------------------------
# Kernel: full Conv2d / ConvTranspose2d chain for one batch image.
#   x_ref : (1, C, S_in)    activation, spatial (permuted) on the lane axis
#   w_ref : (L, 4, C, C)    per-layer, per-tap (t = 2*dh + dw) weight matrices
#   b_ref : (L, C, 1)       per-layer bias
#   o_ref : (1, C, S_out)
# ---------------------------------------------------------------------------
def _conv_or_kernel(x_ref, w_ref, b_ref, o_ref, *, num_layers, transposed):
    a = x_ref[0].astype(jnp.float32)                      # (C, S_in)
    for i in range(num_layers):                           # static Python loop -> fully fused
        b = b_ref[i]                                      # (C, 1), broadcasts over lanes
        if transposed:
            # ConvTranspose2d(k=2, s=2): each input column produces 4 output columns.
            s_in = a.shape[1]
            last = i == num_layers - 1
            pieces = []
            for t in range(4):
                p = jnp.dot(w_ref[i, t], a, preferred_element_type=jnp.float32) + b
                if last:
                    # Write tap block straight to the output ref (lane-aligned slices).
                    o_ref[0, :, t * s_in:(t + 1) * s_in] = p.astype(o_ref.dtype)
                else:
                    pieces.append(p)
            if not last:
                a = jnp.concatenate(pieces, axis=1)       # (C, 4*S_i), tap-major columns
        else:
            # Conv2d(k=2, s=2): taps of one output column are 4 contiguous lane blocks.
            s_out = a.shape[1] // 4
            acc = jnp.dot(w_ref[i, 0], a[:, 0:s_out],
                          preferred_element_type=jnp.float32)
            for t in range(1, 4):
                acc = acc + jnp.dot(w_ref[i, t],
                                    a[:, t * s_out:(t + 1) * s_out],
                                    preferred_element_type=jnp.float32)
            a = acc + b                                   # (C, S_i / 4)
    if not transposed:
        o_ref[0] = a.astype(o_ref.dtype)


# ---------------------------------------------------------------------------
# Wrapper-side layout plumbing (pure reshapes/transposes, handled by XLA).
# ---------------------------------------------------------------------------
def _down_permute(x, L):
    """(N, C, H, W) -> (N, C, H*W) columns in nested tap-major order.

    Column index = t_1*(S/4) + t_2*(S/16) + ... + t_L*(S/4^L) + raster(h_L, w_L),
    where t_k = 2*dh_k + dw_k are the 2x2 taps consumed by layer k.
    """
    N, C, H, W = x.shape
    HL, WL = H >> L, W >> L
    x = x.reshape((N, C, HL) + (2,) * L + (WL,) + (2,) * L)
    perm = [0, 1]
    for k in range(1, L + 1):
        perm += [3 + L - k, 4 + 2 * L - k]                # dh_k, dw_k
    perm += [2, 3 + L]                                    # h_L, w_L
    return jnp.transpose(x, perm).reshape(N, C, H * W)


def _up_decode(cols, L, H0, W0):
    """Inverse plumbing for the upsample chain: (N, C, S_out) -> (N, C, H0*2^L, W0*2^L)."""
    N, C, _ = cols.shape
    x = cols.reshape((N, C) + (2, 2) * L + (H0, W0))
    perm = [0, 1, 2 + 2 * L] + [2 + 2 * (L - k) for k in range(1, L + 1)] \
         + [3 + 2 * L] + [3 + 2 * (L - k) for k in range(1, L + 1)]
    x = jnp.transpose(x, perm)
    return x.reshape(N, C, H0 << L, W0 << L)


@functools.partial(jax.jit, static_argnames=("need",))
def conv_or_forward(x_nchw, params, need):
    """ConvOr.forward.  x_nchw: (N, C, H, W); params: list of (weight, bias) per layer."""
    need = int(need)
    if need == 0:
        return x_nchw

    L = abs(need)
    transposed = need < 0
    N, C, H, W = x_nchw.shape

    if transposed:
        x_cols = x_nchw.reshape(N, C, H * W)              # raster order
        S_in, S_out = H * W, (H * W) << (2 * L)
    else:
        assert H % (1 << L) == 0 and W % (1 << L) == 0, (H, W, L)
        x_cols = _down_permute(x_nchw, L)
        S_in, S_out = H * W, (H * W) >> (2 * L)

    # Per-layer, per-tap (C, C) matrices; taps ordered t = 2*dh + dw.
    w_layers, b_layers = [], []
    for w, b in params:
        taps = []
        for dh in range(2):
            for dw in range(2):
                m = w[:, :, dh, dw]                       # Conv2d OIHW -> (Cout, Cin)
                if transposed:
                    m = jnp.transpose(m)                  # ConvTranspose IOHW -> (Cout, Cin)
                taps.append(m)
        w_layers.append(jnp.stack(taps, axis=0))
        b_layers.append(b)
    w_all = jnp.stack(w_layers, axis=0).astype(jnp.float32)          # (L, 4, C, C)
    b_all = jnp.stack(b_layers, axis=0).astype(jnp.float32).reshape(L, C, 1)

    kernel = functools.partial(_conv_or_kernel, num_layers=L, transposed=transposed)
    out_cols = pl.pallas_call(
        kernel,
        out_shape=jax.ShapeDtypeStruct((N, C, S_out), x_nchw.dtype),
        grid=(N,),
        in_specs=[
            pl.BlockSpec((1, C, S_in), lambda n: (n, 0, 0)),
            pl.BlockSpec((L, 4, C, C), lambda n: (0, 0, 0, 0)),
            pl.BlockSpec((L, C, 1), lambda n: (0, 0, 0)),
        ],
        out_specs=pl.BlockSpec((1, C, S_out), lambda n: (n, 0, 0)),
        compiler_params=pltpu.CompilerParams(
            dimension_semantics=("parallel",)),           # v7x: batch splits across 2 TCs
    )(x_cols, w_all, b_all)

    if transposed:
        return _up_decode(out_cols, L, H, W)
    return out_cols.reshape(N, C, H >> L, W >> L)


# ---------------------------------------------------------------------------
# Pure-JAX reference (lax.conv / einsum) for correctness checking.
# ---------------------------------------------------------------------------
def conv_or_reference(x, params, need):
    need = int(need)
    if need == 0:
        return x
    if need > 0:
        for w, b in params:
            x = jax.lax.conv_general_dilated(
                x, w, window_strides=(2, 2), padding="VALID",
                dimension_numbers=("NCHW", "OIHW", "NCHW")) + b.reshape(1, -1, 1, 1)
        return x
    for w, b in params:                                   # ConvTranspose2d(k=2, s=2)
        n, c, h, wd = x.shape
        cout = w.shape[1]
        y = jnp.einsum("nchw,cdij->ndhiwj", x, w)
        x = y.reshape(n, cout, 2 * h, 2 * wd) + b.reshape(1, -1, 1, 1)
    return x


if __name__ == "__main__":
    key = jax.random.PRNGKey(0)
    N, C, H, W = 2, 4, 16, 16
    x = jax.random.normal(jax.random.fold_in(key, 0), (N, C, H, W), jnp.float32)

    for case_id, need in enumerate((2, -2, 0)):           # down x2, up x2, identity
        params = []
        for i in range(abs(need)):
            kw = jax.random.fold_in(key, 1000 * (case_id + 1) + i)
            w = 0.3 * jax.random.normal(kw, (C, C, 2, 2), jnp.float32)
            b = 0.1 * jax.random.normal(jax.random.fold_in(kw, 1), (C,), jnp.float32)
            params.append((w, b))

        out = jax.block_until_ready(conv_or_forward(x, params, need))
        ref = jax.block_until_ready(conv_or_reference(x, params, need))
        assert out.shape == ref.shape, (need, out.shape, ref.shape)
        assert jnp.allclose(out, ref, rtol=1e-4, atol=1e-4), \
            (need, float(jnp.max(jnp.abs(out - ref))))

    print("KERNEL_OK")
</pallas_src>

<mosaic_0001>
module attributes {stable_mosaic.version = 11 : i64} {
  func.func @_conv_or_kernel(%arg0: i32, %arg1: memref<1x4x256xf32, #tpu.memory_space<vmem>>, %arg2: memref<2x4x4x4xf32, #tpu.memory_space<vmem>>, %arg3: memref<2x4x1xf32, #tpu.memory_space<vmem>>, %arg4: memref<1x4x16xf32, #tpu.memory_space<vmem>>) attributes {dimension_semantics = [#tpu.dimension_semantics<parallel>], iteration_bounds = array<i64: 2>, scalar_prefetch = 0 : i64, scratch_operands = 0 : i64, tpu.core_type = #tpu.core_type<tc>, window_params = [{transform_indices = @transform_0, window_bounds = array<i64: 1, 4, 256>}, {pipeline_mode = #tpu.pipeline_mode<synchronous>, transform_indices = @transform_1, window_bounds = array<i64: 2, 4, 4, 4>}, {pipeline_mode = #tpu.pipeline_mode<synchronous>, transform_indices = @transform_2, window_bounds = array<i64: 2, 4, 1>}, {transform_indices = @transform_3, window_bounds = array<i64: 1, 4, 16>}]} {
    %c0 = arith.constant 0 : index
    %c0_0 = arith.constant 0 : index
    %c0_1 = arith.constant 0 : index
    %0 = vector.load %arg1[%c0, %c0_0, %c0_1] : memref<1x4x256xf32, #tpu.memory_space<vmem>>, vector<1x4x256xf32>
    %1 = vector.shape_cast %0 : vector<1x4x256xf32> to vector<4x256xf32>
    %c0_2 = arith.constant 0 : index
    %c0_3 = arith.constant 0 : index
    %c0_4 = arith.constant 0 : index
    %2 = vector.load %arg3[%c0_2, %c0_3, %c0_4] : memref<2x4x1xf32, #tpu.memory_space<vmem>>, vector<1x4x1xf32>
    %3 = vector.shape_cast %2 : vector<1x4x1xf32> to vector<4x1xf32>
    %c0_5 = arith.constant 0 : index
    %c0_6 = arith.constant 0 : index
    %c0_7 = arith.constant 0 : index
    %c0_8 = arith.constant 0 : index
    %4 = vector.load %arg2[%c0_5, %c0_6, %c0_7, %c0_8] : memref<2x4x4x4xf32, #tpu.memory_space<vmem>>, vector<1x1x4x4xf32>
    %5 = vector.shape_cast %4 : vector<1x1x4x4xf32> to vector<4x4xf32>
    %6 = vector.extract_strided_slice %1 {offsets = [0, 0], sizes = [4, 64], strides = [1, 1]} : vector<4x256xf32> to vector<4x64xf32>
    %cst = arith.constant dense<0.000000e+00> : vector<4x64xf32>
    %7 = tpu.matmul %5, %6, %cst {dimension_numbers = #tpu.dot_dimension_numbers<[1], [0], [0], [1], [0, 0, 1, 1], [], []>} : vector<4x4xf32>, vector<4x64xf32>, vector<4x64xf32> -> vector<4x64xf32>
    %c0_9 = arith.constant 0 : index
    %c1 = arith.constant 1 : index
    %c0_10 = arith.constant 0 : index
    %c0_11 = arith.constant 0 : index
    %8 = vector.load %arg2[%c0_9, %c1, %c0_10, %c0_11] : memref<2x4x4x4xf32, #tpu.memory_space<vmem>>, vector<1x1x4x4xf32>
    %9 = vector.shape_cast %8 : vector<1x1x4x4xf32> to vector<4x4xf32>
    %10 = vector.extract_strided_slice %1 {offsets = [0, 64], sizes = [4, 64], strides = [1, 1]} : vector<4x256xf32> to vector<4x64xf32>
    %cst_12 = arith.constant dense<0.000000e+00> : vector<4x64xf32>
    %11 = tpu.matmul %9, %10, %cst_12 {dimension_numbers = #tpu.dot_dimension_numbers<[1], [0], [0], [1], [0, 0, 1, 1], [], []>} : vector<4x4xf32>, vector<4x64xf32>, vector<4x64xf32> -> vector<4x64xf32>
    %12 = arith.addf %7, %11 : vector<4x64xf32>
    %c0_13 = arith.constant 0 : index
    %c2 = arith.constant 2 : index
    %c0_14 = arith.constant 0 : index
    %c0_15 = arith.constant 0 : index
    %13 = vector.load %arg2[%c0_13, %c2, %c0_14, %c0_15] : memref<2x4x4x4xf32, #tpu.memory_space<vmem>>, vector<1x1x4x4xf32>
    %14 = vector.shape_cast %13 : vector<1x1x4x4xf32> to vector<4x4xf32>
    %15 = vector.extract_strided_slice %1 {offsets = [0, 128], sizes = [4, 64], strides = [1, 1]} : vector<4x256xf32> to vector<4x64xf32>
    %cst_16 = arith.constant dense<0.000000e+00> : vector<4x64xf32>
    %16 = tpu.matmul %14, %15, %cst_16 {dimension_numbers = #tpu.dot_dimension_numbers<[1], [0], [0], [1], [0, 0, 1, 1], [], []>} : vector<4x4xf32>, vector<4x64xf32>, vector<4x64xf32> -> vector<4x64xf32>
    %17 = arith.addf %12, %16 : vector<4x64xf32>
    %c0_17 = arith.constant 0 : index
    %c3 = arith.constant 3 : index
    %c0_18 = arith.constant 0 : index
    %c0_19 = arith.constant 0 : index
    %18 = vector.load %arg2[%c0_17, %c3, %c0_18, %c0_19] : memref<2x4x4x4xf32, #tpu.memory_space<vmem>>, vector<1x1x4x4xf32>
    %19 = vector.shape_cast %18 : vector<1x1x4x4xf32> to vector<4x4xf32>
    %20 = vector.extract_strided_slice %1 {offsets = [0, 192], sizes = [4, 64], strides = [1, 1]} : vector<4x256xf32> to vector<4x64xf32>
    %cst_20 = arith.constant dense<0.000000e+00> : vector<4x64xf32>
    %21 = tpu.matmul %19, %20, %cst_20 {dimension_numbers = #tpu.dot_dimension_numbers<[1], [0], [0], [1], [0, 0, 1, 1], [], []>} : vector<4x4xf32>, vector<4x64xf32>, vector<4x64xf32> -> vector<4x64xf32>
    %22 = arith.addf %17, %21 : vector<4x64xf32>
    %23 = vector.broadcast %3 : vector<4x1xf32> to vector<4x64xf32>
    %24 = arith.addf %22, %23 : vector<4x64xf32>
    %c1_21 = arith.constant 1 : index
    %c0_22 = arith.constant 0 : index
    %c0_23 = arith.constant 0 : index
    %25 = vector.load %arg3[%c1_21, %c0_22, %c0_23] : memref<2x4x1xf32, #tpu.memory_space<vmem>>, vector<1x4x1xf32>
    %26 = vector.shape_cast %25 : vector<1x4x1xf32> to vector<4x1xf32>
    %c1_24 = arith.constant 1 : index
    %c0_25 = arith.constant 0 : index
    %c0_26 = arith.constant 0 : index
    %c0_27 = arith.constant 0 : index
    %27 = vector.load %arg2[%c1_24, %c0_25, %c0_26, %c0_27] : memref<2x4x4x4xf32, #tpu.memory_space<vmem>>, vector<1x1x4x4xf32>
    %28 = vector.shape_cast %27 : vector<1x1x4x4xf32> to vector<4x4xf32>
    %29 = vector.extract_strided_slice %24 {offsets = [0, 0], sizes = [4, 16], strides = [1, 1]} : vector<4x64xf32> to vector<4x16xf32>
    %cst_28 = arith.constant dense<0.000000e+00> : vector<4x16xf32>
    %30 = tpu.matmul %28, %29, %cst_28 {dimension_numbers = #tpu.dot_dimension_numbers<[1], [0], [0], [1], [0, 0, 1, 1], [], []>} : vector<4x4xf32>, vector<4x16xf32>, vector<4x16xf32> -> vector<4x16xf32>
    %c1_29 = arith.constant 1 : index
    %c1_30 = arith.constant 1 : index
    %c0_31 = arith.constant 0 : index
    %c0_32 = arith.constant 0 : index
    %31 = vector.load %arg2[%c1_29, %c1_30, %c0_31, %c0_32] : memref<2x4x4x4xf32, #tpu.memory_space<vmem>>, vector<1x1x4x4xf32>
    %32 = vector.shape_cast %31 : vector<1x1x4x4xf32> to vector<4x4xf32>
    %33 = vector.extract_strided_slice %24 {offsets = [0, 16], sizes = [4, 16], strides = [1, 1]} : vector<4x64xf32> to vector<4x16xf32>
    %cst_33 = arith.constant dense<0.000000e+00> : vector<4x16xf32>
    %34 = tpu.matmul %32, %33, %cst_33 {dimension_numbers = #tpu.dot_dimension_numbers<[1], [0], [0], [1], [0, 0, 1, 1], [], []>} : vector<4x4xf32>, vector<4x16xf32>, vector<4x16xf32> -> vector<4x16xf32>
    %35 = arith.addf %30, %34 : vector<4x16xf32>
    %c1_34 = arith.constant 1 : index
    %c2_35 = arith.constant 2 : index
    %c0_36 = arith.constant 0 : index
    %c0_37 = arith.constant 0 : index
    %36 = vector.load %arg2[%c1_34, %c2_35, %c0_36, %c0_37] : memref<2x4x4x4xf32, #tpu.memory_space<vmem>>, vector<1x1x4x4xf32>
    %37 = vector.shape_cast %36 : vector<1x1x4x4xf32> to vector<4x4xf32>
    %38 = vector.extract_strided_slice %24 {offsets = [0, 32], sizes = [4, 16], strides = [1, 1]} : vector<4x64xf32> to vector<4x16xf32>
    %cst_38 = arith.constant dense<0.000000e+00> : vector<4x16xf32>
    %39 = tpu.matmul %37, %38, %cst_38 {dimension_numbers = #tpu.dot_dimension_numbers<[1], [0], [0], [1], [0, 0, 1, 1], [], []>} : vector<4x4xf32>, vector<4x16xf32>, vector<4x16xf32> -> vector<4x16xf32>
    %40 = arith.addf %35, %39 : vector<4x16xf32>
    %c1_39 = arith.constant 1 : index
    %c3_40 = arith.constant 3 : index
    %c0_41 = arith.constant 0 : index
    %c0_42 = arith.constant 0 : index
    %41 = vector.load %arg2[%c1_39, %c3_40, %c0_41, %c0_42] : memref<2x4x4x4xf32, #tpu.memory_space<vmem>>, vector<1x1x4x4xf32>
    %42 = vector.shape_cast %41 : vector<1x1x4x4xf32> to vector<4x4xf32>
    %43 = vector.extract_strided_slice %24 {offsets = [0, 48], sizes = [4, 16], strides = [1, 1]} : vector<4x64xf32> to vector<4x16xf32>
    %cst_43 = arith.constant dense<0.000000e+00> : vector<4x16xf32>
    %44 = tpu.matmul %42, %43, %cst_43 {dimension_numbers = #tpu.dot_dimension_numbers<[1], [0], [0], [1], [0, 0, 1, 1], [], []>} : vector<4x4xf32>, vector<4x16xf32>, vector<4x16xf32> -> vector<4x16xf32>
    %45 = arith.addf %40, %44 : vector<4x16xf32>
    %46 = vector.broadcast %26 : vector<4x1xf32> to vector<4x16xf32>
    %47 = arith.addf %45, %46 : vector<4x16xf32>
    %c0_44 = arith.constant 0 : index
    %c0_45 = arith.constant 0 : index
    %c0_46 = arith.constant 0 : index
    %48 = vector.load %arg4[%c0_44, %c0_45, %c0_46] : memref<1x4x16xf32, #tpu.memory_space<vmem>>, vector<1x4x16xf32>
    %49 = vector.shape_cast %48 : vector<1x4x16xf32> to vector<4x16xf32>
    %50 = vector.shape_cast %47 : vector<4x16xf32> to vector<1x4x16xf32>
    tpu.vector_store %arg4[%c0_44, %c0_45, %c0_46], %50 {strides = array<i32>} : memref<1x4x16xf32, #tpu.memory_space<vmem>>, vector<1x4x16xf32>,
    return
  }
  func.func @transform_0(%arg0: i32) -> (i32, i32, i32) {
    %c0_i32 = arith.constant 0 : i32
    %c0_i32_0 = arith.constant 0 : i32
    %c0_i32_1 = arith.constant 0 : i32
    return %arg0, %c0_i32, %c0_i32_0 : i32, i32, i32
  }
  func.func @transform_1(%arg0: i32) -> (i32, i32, i32, i32) {
    %c0_i32 = arith.constant 0 : i32
    %c0_i32_0 = arith.constant 0 : i32
    %c0_i32_1 = arith.constant 0 : i32
    %c0_i32_2 = arith.constant 0 : i32
    %c0_i32_3 = arith.constant 0 : i32
    return %c0_i32, %c0_i32_0, %c0_i32_1, %c0_i32_2 : i32, i32, i32, i32
  }
  func.func @transform_2(%arg0: i32) -> (i32, i32, i32) {
    %c0_i32 = arith.constant 0 : i32
    %c0_i32_0 = arith.constant 0 : i32
    %c0_i32_1 = arith.constant 0 : i32
    %c0_i32_2 = arith.constant 0 : i32
    return %c0_i32, %c0_i32_0, %c0_i32_1 : i32, i32, i32
  }
  func.func @transform_3(%arg0: i32) -> (i32, i32, i32) {
    %c0_i32 = arith.constant 0 : i32
    %c0_i32_0 = arith.constant 0 : i32
    %c0_i32_1 = arith.constant 0 : i32
    return %arg0, %c0_i32, %c0_i32_0 : i32, i32, i32
  }
}

</mosaic_0001>

<bundles_post_ra>
// kernel: conv_or_forward.1
= control target key start
LH: loop header
LB: loop body
LE: loop exit
PB: predicated region body
PF: predicated region fallthrough
CT: control target
= control target key end

     0   :  { %s1018_s12 = smov 0   ;;  %s1109_s0 = inlined_call_operand.vmem [shape: f32[2,4,256], index: 0, kind: input, shape index: {}]   ;;  %s1110_s1 = inlined_call_operand.vmem [shape: f32[2,4,4,4], index: 1, kind: input, shape index: {}]   ;;  %s1111_s2 = inlined_call_operand.vmem [shape: f32[2,4,1], index: 2, kind: input, shape index: {}]   ;;  %s1112_s3 = inlined_call_operand.vmem [shape: f32[2,4,16], index: 3, kind: output, shape index: {}]  }
   0x1 LB: > { %s874_s13 = sadd.s32 4294967295, %s989_s12   ;;  %p878_p0 = scmp.ge.s32.totalorder %s989_s12, 1  ;;  %s989_s12 = sphi %s1018_s12, %s13_s12  }
   0x2   : > { %p137_p1 = scmp.lt.s32.totalorder %s989_s12, 3 }
   0x4   : > { %p138_p2 = pnand %p878_p0, %p137_p1 }
   0x5   : > { %p160_p3 = scmp.lt.s32.totalorder (!%p138_p2), %s874_s13, 1  ;;  %v991_v0 = vmov (!%p138_p2), 0.0   ;;  %vm992_vm0 = vmmov (!%p138_p2), 0   ;;  %v170_v1 = vld [vmem:[%s1111_s2] sm:$0xf] (!%p138_p2)  ;;  %v993_v2 = vmov (!%p138_p2), 0  }
   0x6   : > { %141 = sbr.rel (%p138_p2) target bundleno = 694 (0x2b6), region = 32  ;;  %925 = vmatprep.subr.mxu0 (!%p138_p2), %v991_v0  ;;  %930 = vmatprep.subr.mxu1 (!%p138_p2), %v991_v0  ;;  %vm181_vm1 = vcmask (!%p138_p2), 1043456   ;;  %vm177_vm2 = vcmask (!%p138_p2), 31744   ;;  %v171_v3 = vld [vmem:[%s1110_s1] sm:$0xf] (!%p138_p2)  ;;  %s994_s22 = smov (!%p138_p2), 64  }
   0x7   : > { %927 = vmatprep.mubr.msk.f32.mxu0 (!%p138_p2), %vm992_vm0, %v991_v0  ;;  %932 = vmatprep.mubr.msk.f32.mxu1 (!%p138_p2), %vm992_vm0, %v991_v0  ;;  %v882_v6 = vld [vmem:[%s1110_s1 + $0x4] sm:$0xf] (!%p138_p2)  ;;  %v887_v8 = vld [vmem:[%s1110_s1 + $0x8] sm:$0xf] (!%p138_p2)  ;;  %v890_v9 = vld [vmem:[%s1110_s1 + $0xc] sm:$0xf] (!%p138_p2) }
   0x8   : > { %980 = vset.pattern.permute.xlu1 (!%p138_p2), %v993_v2  ;;  %981 = vset.pattern.permute.xlu0 (!%p138_p2), %v993_v2  ;;  %v894_v24 = vld [vmem:[%s1110_s1 + $0x10] sm:$0xf] (!%p138_p2)  ;;  %s995_s4 = smov (!%p138_p2), 96   ;;  %s996_s5 = smov (!%p138_p2), 112   ;;  %v893_v25 = vld [vmem:[%s1111_s2 + $0x4] sm:$0xf] (!%p138_p2) }
   0x9   : > { %490 = vperm.xlu1 (!%p138_p2), %980, %v170_v1   ;;  %s997_s8 = smov (!%p138_p2), 80   ;;  %v895_v26 = vld [vmem:[%s1110_s1 + $0x14] sm:$0xf] (!%p138_p2)  ;;  %v900_v29 = vld [vmem:[%s1110_s1 + $0x18] sm:$0xf] (!%p138_p2)  ;;  %vm819_vm3 = vcmask (!%p138_p2), 125952  }
   0xa   : > { %v903_v30 = vld [vmem:[%s1110_s1 + $0x1c] sm:$0xf] (!%p138_p2) }
   0xd   : > { %s1114_s13 = smov (!%p160_p3, %s874_s13), 1 }
   0xe   : > { %s908_s16 = sshll.u32 %s1114_s13, 3  ;;  %s881_s17 = sshll.u32 %s1114_s13, 2 }
   0xf   : > { %s164_s19 = scalar_lea.vmem %s1109_s0, %s908_s16  ;;  %s168_s20 = scalar_lea.vmem %s1112_s3, %s881_s17 }
  0x10   : > { %v169_v4 = vld [vmem:[%s164_s19] sm:$0xff] }
  0x11   : > { %175 = vrot.lane.b32.xlu0 %v169_v4, %s994_s22  ;;  %v331_v5 = vcombine.high %v169_v4, %v169_v4  ;;  %931 = vmatpush3.msk.msra.mxu1 %vm181_vm1, %v169_v4 }
  0x12   : > { %933 = vmatmul.mubr.msk.f32.vlgmr.msra.gmra.mrb[0].mxu1 %vm177_vm2, %v171_v3  ;;  %940 = vmatprep.subr.mxu1 %v991_v0 }
  0x13   : > { %942 = vmatprep.mubr.msk.f32.mxu1 %vm992_vm0, %v991_v0 }
  0x15   : > { %410 = vrot.lane.b32.xlu0 %v331_v5, %s994_s22 }
  0x83   : > { %v176_v7 = vpop.permute.xlu0 %175 }
  0x84   : > { %926 = vmatpush3.msk.msra.mxu0 %vm181_vm1, %v176_v7 }
  0x85   : > { %928 = vmatmul.mubr.msk.f32.vlgmr.msra.gmra.mrb[0].mxu0 %vm177_vm2, %v882_v6  ;;  %935 = vmatprep.subr.mxu0 %v991_v0 }
  0x86   : > { %937 = vmatprep.mubr.msk.f32.mxu0 %vm992_vm0, %v991_v0  ;;  %936 = vmatpush3.msk.msra.mxu0 %vm181_vm1, %v331_v5 }
  0x87   : > { %v411_v10 = vpop.permute.xlu0 %410  ;;  %945 = vmatprep.subr.mxu0 %v991_v0 }
  0x88   : > { %941 = vmatpush3.msk.msra.mxu1 %vm181_vm1, %v411_v10  ;;  %v491_v21 = vpop.permute.xlu1 %490 }
  0x89   : > { %938 = vmatmul.mubr.msk.f32.vlgmr.msra.gmra.mrb[2].mxu0 %vm177_vm2, %v887_v8  ;;  %943 = vmatmul.mubr.msk.f32.vlgmr.msra.gmra.mrb[2].mxu1 %vm177_vm2, %v890_v9 }
  0x8a   : > { %950 = vmatprep.subr.mxu1 %v991_v0  ;;  %947 = vmatprep.mubr.msk.f32.mxu0 %vm992_vm0, %v991_v0 }
  0x8b   : > { %952 = vmatprep.mubr.msk.f32.mxu1 %vm992_vm0, %v991_v0 }
  0xe5   : > { %v325_v11 = vpop.f32.mrb[0].mxu1 }
  0xe6   : > { %v934_v12 = vpop.f32.mrb[1].mxu1 }
 0x158   : > { %v250_v13 = vpop.f32.mrb[0].mxu0 }
 0x159   : > { %v326_v14 = vadd.f32 %v325_v11, %v250_v13  ;;  %v929_v15 = vpop.f32.mrb[1].mxu0 }
 0x15c   : > { %v403_v16 = vpop.f32.mrb[2].mxu0  ;;  %v483_v17 = vpop.f32.mrb[2].mxu1 }
 0x15d   : > { %v407_v18 = vadd.f32 %v403_v16, %v326_v14  ;;  %v939_v19 = vpop.f32.mrb[3].mxu0  ;;  %v944_v20 = vpop.f32.mrb[3].mxu1 }
 0x15f   : > { %v487_v22 = vadd.f32 %v483_v17, %v407_v18 }
 0x161   : > { %v493_v23 = vadd.f32 %v491_v21, %v487_v22 }
 0x163   : > { %655 = vrot.lane.b32.xlu0 %v493_v23, %s995_s4  ;;  %501 = vrot.lane.b32.xlu1 %v493_v23, %s996_s5 }
 0x164   : > { %951 = vmatpush3.msk.msra.mxu1 %vm181_vm1, %v493_v23 }
 0x165   : > { %960 = vmatprep.subr.mxu1 %v991_v0  ;;  %953 = vmatmul.mubr.msk.f32.vlgmr.msra.gmra.mrb[4].mxu1 %vm177_vm2, %v894_v24 }
 0x166   : > { %962 = vmatprep.mubr.msk.f32.mxu1 %vm992_vm0, %v991_v0 }
 0x167   : > { %735 = vrot.lane.b32.xlu1 %v493_v23, %s997_s8  ;;  %815 = vperm.xlu0 %981, %v893_v25  }
 0x1d5   : > { %v502_v27 = vpop.permute.xlu1 %501  ;;  %v656_v28 = vpop.permute.xlu0 %655 }
 0x1d6   : > { %946 = vmatpush3.msk.msra.mxu0 %vm181_vm1, %v502_v27 }
 0x1d7   : > { %955 = vmatprep.subr.mxu0 %v991_v0  ;;  %948 = vmatmul.mubr.msk.f32.vlgmr.msra.gmra.mrb[4].mxu0 %vm177_vm2, %v895_v26 }
 0x1d8   : > { %956 = vmatpush3.msk.msra.mxu0 %vm181_vm1, %v656_v28  ;;  %957 = vmatprep.mubr.msk.f32.mxu0 %vm992_vm0, %v991_v0 }
 0x1d9   : > { %v736_v31 = vpop.permute.xlu1 %735 }
 0x1da   : > { %961 = vmatpush3.msk.msra.mxu1 %vm181_vm1, %v736_v31 }
 0x1db   : > { %958 = vmatmul.mubr.msk.f32.vlgmr.msra.gmra.mrb[6].mxu0 %vm177_vm2, %v900_v29  ;;  %963 = vmatmul.mubr.msk.f32.vlgmr.msra.gmra.mrb[6].mxu1 %vm177_vm2, %v903_v30 }
 0x1e6   : > { %v816_v42 = vpop.permute.xlu0 %815 }
 0x238   : > { %v649_v32 = vpop.f32.mrb[4].mxu1 }
 0x239   : > { %v954_v33 = vpop.f32.mrb[5].mxu1 }
 0x2aa   : > { %v574_v34 = vpop.f32.mrb[4].mxu0 }
 0x2ab   : > { %v949_v35 = vpop.f32.mrb[5].mxu0  ;;  %v650_v36 = vadd.f32 %v649_v32, %v574_v34 }
 0x2ae   : > { %v728_v37 = vpop.f32.mrb[6].mxu0  ;;  %v808_v38 = vpop.f32.mrb[6].mxu1 }
 0x2af   : > { %v732_v39 = vadd.f32 %v728_v37, %v650_v36  ;;  %v959_v40 = vpop.f32.mrb[7].mxu0  ;;  %v964_v41 = vpop.f32.mrb[7].mxu1 }
 0x2b1   : > { %v812_v43 = vadd.f32 %v808_v38, %v732_v39 }
 0x2b3   : > { %v818_v44 = vadd.f32 %v816_v42, %v812_v43 }
 0x2b5   : > { %820 = vst.msk [vmem:[%s168_s20] sm:$0xf] %vm819_vm3, %v818_v44 }
 0x2b6 PF: > { %s13_s12 = sadd.s32 1, %s989_s12  }
 0x2b7   : > { %p10_p4 = scmp.ge.s32.totalorder %s13_s12, 4  }
 0x2b9   :  { %12 = sbr.rel (!%p10_p4) target bundleno = 1 (0x1), region = 70 }

</bundles_post_ra>
